<compile_context>
chip_gen: v7x
topology: tpu7x:2x2x1
jax: 0.10.0
libtpu: 0.0.40
codegen_flags: <defaults>
</compile_context>

<pallas_src>
import functools

import jax
import jax.numpy as jnp
from jax.experimental import pallas as pl
from jax.experimental.pallas import tpu as pltpu

LANE = 128


def _round_up(x, m):
    return (x + m - 1) // m * m


# ---------------------------------------------------------------------------
# Fused MLP kernel: h = relu(...relu(relu(x@W0+b0)@W1+b1)...@Wn+bn)
# ---------------------------------------------------------------------------
def _make_fused_mlp_kernel(num_layers):
    def kernel(*refs):
        x_ref = refs[0]
        o_ref = refs[-1]
        wb_refs = refs[1:-1]          # alternating (W, b) refs, all lane-padded
        h = x_ref[...]                # (TB, n_in_pad), compute dtype
        for l in range(num_layers):
            w = wb_refs[2 * l][...]       # (d_in_pad, d_out_pad), compute dtype
            b = wb_refs[2 * l + 1][...]   # (1, d_out_pad), f32
            y = jnp.dot(h, w, preferred_element_type=jnp.float32) + b
            h = jnp.maximum(y, 0.0)       # ReLU in f32 on the VPU
            if l < num_layers - 1:
                h = h.astype(w.dtype)     # back to MXU operand dtype
        o_ref[...] = h.astype(o_ref.dtype)
    return kernel


def fused_mlp(x, linears, *, tb=128, compute_dtype=jnp.float32,
              vmem_limit_bytes=32 * 1024 * 1024):
    """Run the whole Linear(+ReLU) stack in a single Pallas call.

    x:       (B, n_in) float32
    linears: list of (W, b) with W (d_in, d_out) and b (1, d_out)
    tb:      batch tile (rounded to a multiple of 8)
    compute_dtype: MXU operand dtype (use jnp.bfloat16 on v6e/v7x for large
                   batches; accumulation stays f32 via preferred_element_type)
    """
    B, n_in = x.shape
    num_layers = len(linears)

    # Lane-dense padding of every feature dim (zero columns/rows are exact:
    # 0-weight cols + 0 bias -> relu(0)=0 -> never leak into later layers).
    dims = [n_in] + [w.shape[1] for (w, _) in linears]
    pdims = [_round_up(d, LANE) for d in dims]

    tb = _round_up(min(tb, _round_up(B, 8)), 8)
    b_pad = _round_up(B, tb)
    n_tiles = b_pad // tb

    x_p = jnp.zeros((b_pad, pdims[0]), jnp.float32).at[:B, :n_in].set(x)
    x_p = x_p.astype(compute_dtype)

    wb_args, wb_specs = [], []
    for l, (w, b) in enumerate(linears):
        d_in, d_out = w.shape
        w_p = jnp.zeros((pdims[l], pdims[l + 1]), compute_dtype)
        w_p = w_p.at[:d_in, :d_out].set(w.astype(compute_dtype))
        b_p = jnp.zeros((1, pdims[l + 1]), jnp.float32).at[:, :d_out].set(b)
        wb_args += [w_p, b_p]
        # Constant index_maps: weights/biases loaded once, resident across tiles.
        wb_specs += [
            pl.BlockSpec(w_p.shape, lambda i: (0, 0)),
            pl.BlockSpec(b_p.shape, lambda i: (0, 0)),
        ]

    flops = 2 * b_pad * sum(a * b_ for a, b_ in zip(pdims[:-1], pdims[1:]))
    bytes_accessed = (
        x_p.size * x_p.dtype.itemsize
        + sum(a.size * a.dtype.itemsize for a in wb_args)
        + b_pad * pdims[-1] * 4)

    out = pl.pallas_call(
        _make_fused_mlp_kernel(num_layers),
        out_shape=jax.ShapeDtypeStruct((b_pad, pdims[-1]), jnp.float32),
        grid_spec=pltpu.PrefetchScalarGridSpec(
            num_scalar_prefetch=0,
            grid=(n_tiles,),
            in_specs=[pl.BlockSpec((tb, pdims[0]), lambda i: (i, 0))] + wb_specs,
            out_specs=pl.BlockSpec((tb, pdims[-1]), lambda i: (i, 0)),
        ),
        compiler_params=pltpu.CompilerParams(
            dimension_semantics=("parallel",),      # batch tiles split across TCs
            vmem_limit_bytes=vmem_limit_bytes),
        cost_estimate=pl.CostEstimate(
            flops=flops, transcendentals=0, bytes_accessed=bytes_accessed),
    )(x_p, *wb_args)

    # Strip batch + lane padding outside the kernel (stores inside stay dense).
    return out[:B, :dims[-1]]


# ---------------------------------------------------------------------------
# Model: parameters + forward
# ---------------------------------------------------------------------------
def init_params(key, emb_szs, n_cont, out_sz, layers):
    params = {"embeds": [], "linears": []}
    n_embs = sum(nf for _, nf in emb_szs)
    n_in = n_embs + n_cont

    keys = jax.random.split(key, len(emb_szs) + 2 * (len(layers) + 1))
    ki = 0

    # nn.Embedding: weight ~ N(0, 1)
    for (ni, nf) in emb_szs:
        params["embeds"].append(
            jax.random.normal(keys[ki], (ni, nf), dtype=jnp.float32))
        ki += 1

    # nn.Linear: uniform(-1/sqrt(fan_in), 1/sqrt(fan_in)); stored as (in, out)
    dims = [n_in] + list(layers) + [out_sz]
    for d_in, d_out in zip(dims[:-1], dims[1:]):
        bound = 1.0 / jnp.sqrt(jnp.float32(d_in))
        w = jax.random.uniform(keys[ki], (d_in, d_out), jnp.float32,
                               minval=-bound, maxval=bound)
        ki += 1
        b = jax.random.uniform(keys[ki], (1, d_out), jnp.float32,
                               minval=-bound, maxval=bound)
        ki += 1
        params["linears"].append((w, b))
    return params


@jax.jit
def tabular_model_relu_forward(params, x_cat, x_cont):
    # Embedding lookups + concat: plain-JAX glue (tiny tables, XLA gather).
    # TODO(synk): optionally fold the gather+concat into the fused kernel via
    # scalar-prefetched indices / one-hot MXU gather for large batches.
    embeddings = [jnp.take(t, x_cat[:, i], axis=0)
                  for i, t in enumerate(params["embeds"])]
    x = jnp.concatenate(embeddings, axis=1)      # emb_drop: identity (eval)
    x = jnp.concatenate([x, x_cont], axis=1)

    # Hot path: the entire MLP (hidden Linear+ReLU+Dropout(identity) stack and
    # the final Linear+ReLU) runs in ONE Pallas kernel.
    return fused_mlp(x, params["linears"], tb=8)


# ---------------------------------------------------------------------------
# Pure-JAX reference for a sanity check
# ---------------------------------------------------------------------------
def reference_forward(params, x_cat, x_cont):
    embeddings = [jnp.take(t, x_cat[:, i], axis=0)
                  for i, t in enumerate(params["embeds"])]
    x = jnp.concatenate(embeddings + [x_cont], axis=1)
    for (w, b) in params["linears"]:
        x = jnp.maximum(x @ w + b, 0.0)   # ReLU also after the final Linear
    return x


if __name__ == "__main__":
    # Small config consistent with the module's __init__ signature.
    emb_szs = [(10, 4), (6, 3)]          # two categorical cols -> 4+3=7 emb dims
    n_cont = 4
    out_sz = 2
    layers = [32, 16]
    batch = 32                           # with tb=8 -> 4 pipelined batch tiles

    key = jax.random.PRNGKey(0)
    kp, kc1, kc2, kx = jax.random.split(key, 4)
    params = init_params(kp, emb_szs, n_cont, out_sz, layers)

    x_cat = jnp.stack(
        [jax.random.randint(kc1, (batch,), 0, emb_szs[0][0]),
         jax.random.randint(kc2, (batch,), 0, emb_szs[1][0])], axis=1
    ).astype(jnp.int32)                  # (batch, 2)
    x_cont = jax.random.normal(kx, (batch, n_cont), dtype=jnp.float32)

    out = tabular_model_relu_forward(params, x_cat, x_cont)
    out = jax.block_until_ready(out)

    ref = reference_forward(params, x_cat, x_cont)
    assert out.shape == (batch, out_sz)
    assert jnp.allclose(out, ref, atol=1e-5, rtol=1e-5)

    print("KERNEL_OK")
</pallas_src>

<mosaic_0001>
module attributes {stable_mosaic.version = 11 : i64} {
  func.func @kernel(%arg0: i32, %arg1: memref<8x128xf32, #tpu.memory_space<vmem>>, %arg2: memref<128x128xf32, #tpu.memory_space<vmem>>, %arg3: memref<1x128xf32, #tpu.memory_space<vmem>>, %arg4: memref<128x128xf32, #tpu.memory_space<vmem>>, %arg5: memref<1x128xf32, #tpu.memory_space<vmem>>, %arg6: memref<128x128xf32, #tpu.memory_space<vmem>>, %arg7: memref<1x128xf32, #tpu.memory_space<vmem>>, %arg8: memref<8x128xf32, #tpu.memory_space<vmem>>) attributes {dimension_semantics = [#tpu.dimension_semantics<parallel>], iteration_bounds = array<i64: 4>, scalar_prefetch = 0 : i64, scratch_operands = 0 : i64, tpu.core_type = #tpu.core_type<tc>, window_params = [{transform_indices = @transform_0, window_bounds = array<i64: 8, 128>}, {pipeline_mode = #tpu.pipeline_mode<synchronous>, transform_indices = @transform_1, window_bounds = array<i64: 128, 128>}, {pipeline_mode = #tpu.pipeline_mode<synchronous>, transform_indices = @transform_2, window_bounds = array<i64: 1, 128>}, {pipeline_mode = #tpu.pipeline_mode<synchronous>, transform_indices = @transform_3, window_bounds = array<i64: 128, 128>}, {pipeline_mode = #tpu.pipeline_mode<synchronous>, transform_indices = @transform_4, window_bounds = array<i64: 1, 128>}, {pipeline_mode = #tpu.pipeline_mode<synchronous>, transform_indices = @transform_5, window_bounds = array<i64: 128, 128>}, {pipeline_mode = #tpu.pipeline_mode<synchronous>, transform_indices = @transform_6, window_bounds = array<i64: 1, 128>}, {transform_indices = @transform_7, window_bounds = array<i64: 8, 128>}]} {
    %c0 = arith.constant 0 : index
    %c0_0 = arith.constant 0 : index
    %0 = vector.load %arg1[%c0, %c0_0] : memref<8x128xf32, #tpu.memory_space<vmem>>, vector<8x128xf32>
    %c0_1 = arith.constant 0 : index
    %c0_2 = arith.constant 0 : index
    %1 = vector.load %arg2[%c0_1, %c0_2] : memref<128x128xf32, #tpu.memory_space<vmem>>, vector<128x128xf32>
    %c0_3 = arith.constant 0 : index
    %c0_4 = arith.constant 0 : index
    %2 = vector.load %arg3[%c0_3, %c0_4] : memref<1x128xf32, #tpu.memory_space<vmem>>, vector<1x128xf32>
    %cst = arith.constant dense<0.000000e+00> : vector<8x128xf32>
    %3 = tpu.matmul %0, %1, %cst {dimension_numbers = #tpu.dot_dimension_numbers<[1], [0], [0], [1], [0, 0, 1, 1], [], []>} : vector<8x128xf32>, vector<128x128xf32>, vector<8x128xf32> -> vector<8x128xf32>
    %4 = vector.broadcast %2 : vector<1x128xf32> to vector<8x128xf32>
    %5 = arith.addf %3, %4 : vector<8x128xf32>
    %cst_5 = arith.constant 0.000000e+00 : f32
    %6 = vector.broadcast %cst_5 : f32 to vector<8x128xf32>
    %7 = arith.maximumf %5, %6 : vector<8x128xf32>
    %c0_6 = arith.constant 0 : index
    %c0_7 = arith.constant 0 : index
    %8 = vector.load %arg4[%c0_6, %c0_7] : memref<128x128xf32, #tpu.memory_space<vmem>>, vector<128x128xf32>
    %c0_8 = arith.constant 0 : index
    %c0_9 = arith.constant 0 : index
    %9 = vector.load %arg5[%c0_8, %c0_9] : memref<1x128xf32, #tpu.memory_space<vmem>>, vector<1x128xf32>
    %cst_10 = arith.constant dense<0.000000e+00> : vector<8x128xf32>
    %10 = tpu.matmul %7, %8, %cst_10 {dimension_numbers = #tpu.dot_dimension_numbers<[1], [0], [0], [1], [0, 0, 1, 1], [], []>} : vector<8x128xf32>, vector<128x128xf32>, vector<8x128xf32> -> vector<8x128xf32>
    %11 = vector.broadcast %9 : vector<1x128xf32> to vector<8x128xf32>
    %12 = arith.addf %10, %11 : vector<8x128xf32>
    %cst_11 = arith.constant 0.000000e+00 : f32
    %13 = vector.broadcast %cst_11 : f32 to vector<8x128xf32>
    %14 = arith.maximumf %12, %13 : vector<8x128xf32>
    %c0_12 = arith.constant 0 : index
    %c0_13 = arith.constant 0 : index
    %15 = vector.load %arg6[%c0_12, %c0_13] : memref<128x128xf32, #tpu.memory_space<vmem>>, vector<128x128xf32>
    %c0_14 = arith.constant 0 : index
    %c0_15 = arith.constant 0 : index
    %16 = vector.load %arg7[%c0_14, %c0_15] : memref<1x128xf32, #tpu.memory_space<vmem>>, vector<1x128xf32>
    %cst_16 = arith.constant dense<0.000000e+00> : vector<8x128xf32>
    %17 = tpu.matmul %14, %15, %cst_16 {dimension_numbers = #tpu.dot_dimension_numbers<[1], [0], [0], [1], [0, 0, 1, 1], [], []>} : vector<8x128xf32>, vector<128x128xf32>, vector<8x128xf32> -> vector<8x128xf32>
    %18 = vector.broadcast %16 : vector<1x128xf32> to vector<8x128xf32>
    %19 = arith.addf %17, %18 : vector<8x128xf32>
    %cst_17 = arith.constant 0.000000e+00 : f32
    %20 = vector.broadcast %cst_17 : f32 to vector<8x128xf32>
    %21 = arith.maximumf %19, %20 : vector<8x128xf32>
    %c0_18 = arith.constant 0 : index
    %c0_19 = arith.constant 0 : index
    %22 = vector.load %arg8[%c0_18, %c0_19] : memref<8x128xf32, #tpu.memory_space<vmem>>, vector<8x128xf32>
    tpu.vector_store %arg8[%c0_18, %c0_19], %21 {strides = array<i32>} : memref<8x128xf32, #tpu.memory_space<vmem>>, vector<8x128xf32>,
    return
  }
  func.func @transform_0(%arg0: i32) -> (i32, i32) {
    %c0_i32 = arith.constant 0 : i32
    %c0_i32_0 = arith.constant 0 : i32
    return %arg0, %c0_i32 : i32, i32
  }
  func.func @transform_1(%arg0: i32) -> (i32, i32) {
    %c0_i32 = arith.constant 0 : i32
    %c0_i32_0 = arith.constant 0 : i32
    %c0_i32_1 = arith.constant 0 : i32
    return %c0_i32, %c0_i32_0 : i32, i32
  }
  func.func @transform_2(%arg0: i32) -> (i32, i32) {
    %c0_i32 = arith.constant 0 : i32
    %c0_i32_0 = arith.constant 0 : i32
    %c0_i32_1 = arith.constant 0 : i32
    return %c0_i32, %c0_i32_0 : i32, i32
  }
  func.func @transform_3(%arg0: i32) -> (i32, i32) {
    %c0_i32 = arith.constant 0 : i32
    %c0_i32_0 = arith.constant 0 : i32
    %c0_i32_1 = arith.constant 0 : i32
    return %c0_i32, %c0_i32_0 : i32, i32
  }
  func.func @transform_4(%arg0: i32) -> (i32, i32) {
    %c0_i32 = arith.constant 0 : i32
    %c0_i32_0 = arith.constant 0 : i32
    %c0_i32_1 = arith.constant 0 : i32
    return %c0_i32, %c0_i32_0 : i32, i32
  }
  func.func @transform_5(%arg0: i32) -> (i32, i32) {
    %c0_i32 = arith.constant 0 : i32
    %c0_i32_0 = arith.constant 0 : i32
    %c0_i32_1 = arith.constant 0 : i32
    return %c0_i32, %c0_i32_0 : i32, i32
  }
  func.func @transform_6(%arg0: i32) -> (i32, i32) {
    %c0_i32 = arith.constant 0 : i32
    %c0_i32_0 = arith.constant 0 : i32
    %c0_i32_1 = arith.constant 0 : i32
    return %c0_i32, %c0_i32_0 : i32, i32
  }
  func.func @transform_7(%arg0: i32) -> (i32, i32) {
    %c0_i32 = arith.constant 0 : i32
    %c0_i32_0 = arith.constant 0 : i32
    return %arg0, %c0_i32 : i32, i32
  }
}

</mosaic_0001>

<bundles_post_ra>
// kernel: tabular_model_relu_forward.1
= control target key start
LH: loop header
LB: loop body
LE: loop exit
PB: predicated region body
PF: predicated region fallthrough
CT: control target
= control target key end

     0   :  { %s913_s24 = smov 0   ;;  %s1124_s0 = inlined_call_operand.vmem [shape: f32[32,128], index: 0, kind: input, shape index: {}]   ;;  %s1125_s1 = inlined_call_operand.vmem [shape: f32[128,128], index: 1, kind: input, shape index: {}]   ;;  %s1126_s2 = inlined_call_operand.vmem [shape: f32[1,128], index: 2, kind: input, shape index: {}]   ;;  %s1127_s3 = inlined_call_operand.vmem [shape: f32[128,128], index: 3, kind: input, shape index: {}]   ;;  %s1128_s4 = inlined_call_operand.vmem [shape: f32[1,128], index: 4, kind: input, shape index: {}]   ;;  %s1129_s5 = inlined_call_operand.vmem [shape: f32[128,128], index: 5, kind: input, shape index: {}]   ;;  %s1130_s6 = inlined_call_operand.vmem [shape: f32[1,128], index: 6, kind: input, shape index: {}]   ;;  %s1131_s7 = inlined_call_operand.vmem [shape: f32[32,128], index: 7, kind: output, shape index: {}]  }
   0x1 LB: > { %s611_s25 = sadd.s32 4294967295, %s868_s24   ;;  %p615_p0 = scmp.ge.s32.totalorder %s868_s24, 1  ;;  %s868_s24 = sphi %s913_s24, %s17_s24  }
   0x2   : > { %p236_p1 = scmp.lt.s32.totalorder %s868_s24, 5 }
   0x4   : > { %p237_p2 = pnand %p615_p0, %p236_p1 }
   0x5   : > { %v275_v0 = vld [vmem:[%s1125_s1] sm:$0xff] (!%p237_p2)  ;;  %v276_v1 = vld [vmem:[%s1125_s1 + $0x8] sm:$0xff] (!%p237_p2)  ;;  %v277_v2 = vld [vmem:[%s1125_s1 + $0x10] sm:$0xff] (!%p237_p2)  ;;  %v870_v3 = vmov (!%p237_p2), 0.0|0.0   ;;  %vm871_vm0 = vmmov (!%p237_p2), 0   ;;  %v872_v6 = vmov (!%p237_p2), 0.0  }
   0x6   : > { %240 = sbr.rel (%p237_p2) target bundleno = 688 (0x2b0), region = 48  ;;  %779 = vmatprep.subr.bf16.mxu0 (!%p237_p2), %v870_v3  ;;  %v780_v4 = vpack.c.bf16 (!%p237_p2), %v276_v1, %v275_v0  ;;  %v278_v5 = vld [vmem:[%s1125_s1 + $0x18] sm:$0xff] (!%p237_p2)  ;;  %706 = vmatprep.mubr.msk.f32.mxu0 (!%p237_p2), %vm871_vm0, %v872_v6  ;;  %v279_v8 = vld [vmem:[%s1125_s1 + $0x20] sm:$0xff] (!%p237_p2)  ;;  %v280_v9 = vld [vmem:[%s1125_s1 + $0x28] sm:$0xff] (!%p237_p2)  ;;  %p266_p3 = scmp.lt.s32.totalorder (!%p237_p2), %s611_s25, 3 }
   0x7   : > { %803 = vmatprep.subr.bf16.mxu1 (!%p237_p2), %v870_v3  ;;  %741 = vmatprep.mubr.msk.f32.mxu1 (!%p237_p2), %vm871_vm0, %v872_v6  ;;  %v783_v7 = vpack.c.bf16 (!%p237_p2), %v278_v5, %v277_v2  ;;  %v369_v10 = vld [vmem:[%s1127_s3] sm:$0xff] (!%p237_p2)  ;;  %v370_v11 = vld [vmem:[%s1127_s3 + $0x8] sm:$0xff] (!%p237_p2)  ;;  %v371_v13 = vld [vmem:[%s1127_s3 + $0x10] sm:$0xff] (!%p237_p2)  ;;  %v786_v15 = vpack.c.bf16 (!%p237_p2), %v280_v9, %v279_v8 }
   0x8   : > { %781 = vmatpush3.bf16.msra.mxu0 (!%p237_p2), %v780_v4  ;;  %v804_v12 = vpack.c.bf16 (!%p237_p2), %v370_v11, %v369_v10  ;;  %v372_v14 = vld [vmem:[%s1127_s3 + $0x18] sm:$0xff] (!%p237_p2)  ;;  %v281_v16 = vld [vmem:[%s1125_s1 + $0x30] sm:$0xff] (!%p237_p2)  ;;  %v373_v19 = vld [vmem:[%s1127_s3 + $0x20] sm:$0xff] (!%p237_p2) }
   0x9   : > { %782 = vmatprep.subr.bf16.mxu0 (!%p237_p2), %v870_v3  ;;  %v282_v17 = vld [vmem:[%s1125_s1 + $0x38] sm:$0xff] (!%p237_p2)  ;;  %v807_v18 = vpack.c.bf16 (!%p237_p2), %v372_v14, %v371_v13  ;;  %v374_v20 = vld [vmem:[%s1127_s3 + $0x28] sm:$0xff] (!%p237_p2)  ;;  %v283_v22 = vld [vmem:[%s1125_s1 + $0x40] sm:$0xff] (!%p237_p2) }
   0xa   : > { %805 = vmatpush3.bf16.msra.mxu1 (!%p237_p2), %v804_v12  ;;  %v789_v21 = vpack.c.bf16 (!%p237_p2), %v282_v17, %v281_v16  ;;  %v284_v23 = vld [vmem:[%s1125_s1 + $0x48] sm:$0xff] (!%p237_p2)  ;;  %v810_v24 = vpack.c.bf16 (!%p237_p2), %v374_v20, %v373_v19  ;;  %v375_v25 = vld [vmem:[%s1127_s3 + $0x30] sm:$0xff] (!%p237_p2)  ;;  %v376_v26 = vld [vmem:[%s1127_s3 + $0x38] sm:$0xff] (!%p237_p2) }
   0xb   : > { %806 = vmatprep.subr.bf16.mxu1 (!%p237_p2), %v870_v3  ;;  %v792_v27 = vpack.c.bf16 (!%p237_p2), %v284_v23, %v283_v22  ;;  %v285_v28 = vld [vmem:[%s1125_s1 + $0x50] sm:$0xff] (!%p237_p2)  ;;  %v286_v29 = vld [vmem:[%s1125_s1 + $0x58] sm:$0xff] (!%p237_p2)  ;;  %v813_v30 = vpack.c.bf16 (!%p237_p2), %v376_v26, %v375_v25  ;;  %v377_v31 = vld [vmem:[%s1127_s3 + $0x40] sm:$0xff] (!%p237_p2) }
   0xc   : > { %784 = vmatpush3.bf16.msra.mxu0 (!%p237_p2), %v783_v7  ;;  %v378_v32 = vld [vmem:[%s1127_s3 + $0x48] sm:$0xff] (!%p237_p2)  ;;  %v795_v33 = vpack.c.bf16 (!%p237_p2), %v286_v29, %v285_v28  ;;  %v287_v34 = vld [vmem:[%s1125_s1 + $0x60] sm:$0xff] (!%p237_p2)  ;;  %v379_v37 = vld [vmem:[%s1127_s3 + $0x50] sm:$0xff] (!%p237_p2) }
   0xd   : > { %785 = vmatprep.subr.bf16.mxu0 %v870_v3  ;;  %v288_v35 = vld [vmem:[%s1125_s1 + $0x68] sm:$0xff]  ;;  %v816_v36 = vpack.c.bf16 %v378_v32, %v377_v31  ;;  %s1133_s25 = smov (!%p266_p3, %s611_s25), 3  ;;  %v380_v38 = vld [vmem:[%s1127_s3 + $0x58] sm:$0xff]  ;;  %v289_v40 = vld [vmem:[%s1125_s1 + $0x70] sm:$0xff] }
   0xe   : > { %808 = vmatpush3.bf16.msra.mxu1 %v807_v18  ;;  %v798_v39 = vpack.c.bf16 %v288_v35, %v287_v34  ;;  %v290_v41 = vld [vmem:[%s1125_s1 + $0x78] sm:$0xff]  ;;  %v819_v42 = vpack.c.bf16 %v380_v38, %v379_v37  ;;  %s616_s17 = sshll.u32 %s1133_s25, 3  ;;  %v381_v43 = vld [vmem:[%s1127_s3 + $0x60] sm:$0xff]  ;;  %v382_v44 = vld [vmem:[%s1127_s3 + $0x68] sm:$0xff] }
   0xf   : > { %809 = vmatprep.subr.bf16.mxu1 %v870_v3  ;;  %v801_v45 = vpack.c.bf16 %v290_v41, %v289_v40  ;;  %s269_s26 = scalar_lea.vmem %s1124_s0, %s616_s17  ;;  %v822_v46 = vpack.c.bf16 %v382_v44, %v381_v43  ;;  %v383_v48 = vld [vmem:[%s1127_s3 + $0x70] sm:$0xff]  ;;  %v384_v49 = vld [vmem:[%s1127_s3 + $0x78] sm:$0xff]  ;;  %v463_v51 = vld [vmem:[%s1129_s5] sm:$0xff]  ;;  %s273_s8 = scalar_lea.vmem %s1131_s7, %s616_s17 }
  0x10   : > { %787 = vmatpush3.bf16.msra.mxu0 %v786_v15  ;;  %v274_v47 = vld [vmem:[%s269_s26] sm:$0xff]  ;;  %v825_v50 = vpack.c.bf16 %v384_v49, %v383_v48  ;;  %v464_v52 = vld [vmem:[%s1129_s5 + $0x8] sm:$0xff]  ;;  %v465_v53 = vld [vmem:[%s1129_s5 + $0x10] sm:$0xff] }
  0x11   : > { %788 = vmatprep.subr.bf16.mxu0 %v870_v3  ;;  %v828_v54 = vpack.c.bf16 %v464_v52, %v463_v51  ;;  %v466_v55 = vld [vmem:[%s1129_s5 + $0x18] sm:$0xff]  ;;  %v467_v57 = vld [vmem:[%s1129_s5 + $0x20] sm:$0xff]  ;;  %v468_v58 = vld [vmem:[%s1129_s5 + $0x28] sm:$0xff] }
  0x12   : > { %811 = vmatpush3.bf16.msra.mxu1 %v810_v24  ;;  %v831_v56 = vpack.c.bf16 %v466_v55, %v465_v53  ;;  %v834_v59 = vpack.c.bf16 %v468_v58, %v467_v57  ;;  %v469_v60 = vld [vmem:[%s1129_s5 + $0x30] sm:$0xff]  ;;  %v470_v61 = vld [vmem:[%s1129_s5 + $0x38] sm:$0xff]  ;;  %v471_v63 = vld [vmem:[%s1129_s5 + $0x40] sm:$0xff] }
  0x13   : > { %812 = vmatprep.subr.bf16.mxu1 %v870_v3  ;;  %v837_v62 = vpack.c.bf16 %v470_v61, %v469_v60  ;;  %v472_v0 = vld [vmem:[%s1129_s5 + $0x48] sm:$0xff]  ;;  %v473_v2 = vld [vmem:[%s1129_s5 + $0x50] sm:$0xff]  ;;  %v474_v4 = vld [vmem:[%s1129_s5 + $0x58] sm:$0xff] }
  0x14   : > { %790 = vmatpush3.bf16.msra.mxu0 %v789_v21  ;;  %v840_v1 = vpack.c.bf16 %v472_v0, %v471_v63  ;;  %v843_v5 = vpack.c.bf16 %v474_v4, %v473_v2  ;;  %v476_v7 = vld [vmem:[%s1129_s5 + $0x68] sm:$0xff]  ;;  %v618_v9 = vld [vmem:[%s1126_s2] ss:$0 sm:$0xff]  ;;  %v477_v14 = vld [vmem:[%s1129_s5 + $0x70] sm:$0xff] }
  0x15   : > { %791 = vmatprep.subr.bf16.mxu0 %v870_v3  ;;  %v478_v15 = vld [vmem:[%s1129_s5 + $0x78] sm:$0xff]  ;;  %v620_v21 = vld [vmem:[%s1130_s6] ss:$0 sm:$0xff] }
  0x16   : > { %814 = vmatpush3.bf16.msra.mxu1 %v813_v30  ;;  %v849_v16 = vpack.c.bf16 %v478_v15, %v477_v14 }
  0x17   : > { %815 = vmatprep.subr.bf16.mxu1 %v870_v3 }
  0x18   : > { %793 = vmatpush3.bf16.msra.mxu0 %v792_v27 }
  0x19   : > { %794 = vmatprep.subr.bf16.mxu0 %v870_v3 }
  0x1a   : > { %817 = vmatpush3.bf16.msra.mxu1 %v816_v36 }
  0x1b   : > { %818 = vmatprep.subr.bf16.mxu1 %v870_v3 }
  0x1c   : > { %796 = vmatpush3.bf16.msra.mxu0 %v795_v33 }
  0x1d   : > { %797 = vmatprep.subr.bf16.mxu0 %v870_v3 }
  0x1e   : > { %820 = vmatpush3.bf16.msra.mxu1 %v819_v42 }
  0x1f   : > { %821 = vmatprep.subr.bf16.mxu1 %v870_v3 }
  0x20   : > { %799 = vmatpush3.bf16.msra.mxu0 %v798_v39 }
  0x21   : > { %800 = vmatprep.subr.bf16.mxu0 %v870_v3 }
  0x22   : > { %823 = vmatpush3.bf16.msra.mxu1 %v822_v46 }
  0x23   : > { %824 = vmatprep.subr.bf16.mxu1 %v870_v3 }
  0x24   : > { %802 = vmatpush3.bf16.msra.mxu0 %v801_v45 }
  0x25   : > { %827 = vmatprep.subr.bf16.mxu0 %v870_v3 }
  0x26   : > { %826 = vmatpush3.bf16.msra.mxu1 %v825_v50 }
  0x27   : > { %707 = vmatmul.mubr.f32.vlgmr.msra.gmra.mrb[0].mxu0 %v274_v47 }
  0x28   : > { %776 = vmatprep.mubr.msk.f32.mxu0 %vm871_vm0, %v872_v6  ;;  %829 = vmatpush3.bf16.msra.mxu0 %v828_v54  ;;  %v475_v6 = vld [vmem:[%s1129_s5 + $0x60] sm:$0xff] }
  0x29   : > { %830 = vmatprep.subr.bf16.mxu0 %v870_v3  ;;  %v846_v8 = vpack.c.bf16 %v476_v7, %v475_v6 }
  0x2c   : > { %832 = vmatpush3.bf16.msra.mxu0 %v831_v56 }
  0x2d   : > { %833 = vmatprep.subr.bf16.mxu0 %v870_v3 }
  0x30   : > { %835 = vmatpush3.bf16.msra.mxu0 %v834_v59 }
  0x31   : > { %836 = vmatprep.subr.bf16.mxu0 %v870_v3 }
  0x34   : > { %838 = vmatpush3.bf16.msra.mxu0 %v837_v62 }
  0x35   : > { %839 = vmatprep.subr.bf16.mxu0 %v870_v3 }
  0x38   : > { %841 = vmatpush3.bf16.msra.mxu0 %v840_v1 }
  0x39   : > { %842 = vmatprep.subr.bf16.mxu0 %v870_v3 }
  0x3c   : > { %844 = vmatpush3.bf16.msra.mxu0 %v843_v5 }
  0x3d   : > { %845 = vmatprep.subr.bf16.mxu0 %v870_v3 }
  0x40   : > { %847 = vmatpush3.bf16.msra.mxu0 %v846_v8 }
  0x41   : > { %848 = vmatprep.subr.bf16.mxu0 %v870_v3  ;;  %v619_v3 = vld [vmem:[%s1128_s4] ss:$0 sm:$0xff] }
  0x44   : > { %850 = vmatpush3.bf16.msra.mxu0 %v849_v16 }
  0xfa   : > { %v364_v10 = vpop.f32.mrb[0].mxu0 }
  0xfb   : > { %v365_v11 = vadd.f32 %v618_v9, %v364_v10  ;;  %v708_v12 = vpop.f32.mrb[1].mxu0 }
  0xfd   : > { %v368_v13 = vmax.f32 %v365_v11, 0.0 }
  0xff   : > { %742 = vmatmul.mubr.f32.vlgmr.msra.gmra.mrb[0].mxu1 %v368_v13 }
 0x1d2   : > { %v458_v17 = vpop.f32.mrb[0].mxu1 }
 0x1d3   : > { %v459_v18 = vadd.f32 %v619_v3, %v458_v17  ;;  %v743_v19 = vpop.f32.mrb[1].mxu1 }
 0x1d5   : > { %v462_v20 = vmax.f32 %v459_v18, 0.0 }
 0x1d7   : > { %777 = vmatmul.mubr.f32.vlgmr.msra.gmra.mrb[2].mxu0 %v462_v20 }
 0x2aa   : > { %v552_v22 = vpop.f32.mrb[2].mxu0 }
 0x2ab   : > { %v553_v23 = vadd.f32 %v620_v21, %v552_v22  ;;  %v778_v24 = vpop.f32.mrb[3].mxu0 }
 0x2ad   : > { %v556_v25 = vmax.f32 %v553_v23, 0.0 }
 0x2af   : > { %557 = vst [vmem:[%s273_s8] sm:$0xff] %v556_v25 }
 0x2b0 PF: > { %s17_s24 = sadd.s32 1, %s868_s24  }
 0x2b1   : > { %p14_p4 = scmp.ge.s32.totalorder %s17_s24, 6  }
 0x2b3   :  { %16 = sbr.rel (!%p14_p4) target bundleno = 1 (0x1), region = 78 }

</bundles_post_ra>
